<compile_context>
chip_gen: v5e
topology: v5e:2x2
jax: 0.10.0
libtpu: 0.0.40
codegen_flags: <defaults>
</compile_context>

<pallas_src>
import jax
import jax.numpy as jnp
from jax.experimental import pallas as pl
from jax.experimental.pallas import tpu as pltpu


def _round_up(x, m):
    return ((x + m - 1) // m) * m


def decoder_kernel(z_ref,
                   w1_ref, b1_ref,
                   w2_ref, b2_ref,
                   w3_ref, b3_ref,
                   w4_ref, b4_ref,
                   o_ref):
    # linear1 + relu  (bf16 MXU inputs, f32 accumulation, f32 bias/ReLU on VPU)
    h = jnp.dot(z_ref[...].astype(jnp.bfloat16), w1_ref[...],
                preferred_element_type=jnp.float32)
    h = jnp.maximum(h + b1_ref[...], 0.0)
    # linear2 + relu
    h = jnp.dot(h.astype(jnp.bfloat16), w2_ref[...],
                preferred_element_type=jnp.float32)
    h = jnp.maximum(h + b2_ref[...], 0.0)
    # linear3 + relu
    h = jnp.dot(h.astype(jnp.bfloat16), w3_ref[...],
                preferred_element_type=jnp.float32)
    h = jnp.maximum(h + b3_ref[...], 0.0)
    # linear4 (no activation)
    h = jnp.dot(h.astype(jnp.bfloat16), w4_ref[...],
                preferred_element_type=jnp.float32)
    o_ref[...] = (h + b4_ref[...]).astype(o_ref.dtype)


def decoder_forward(z, params, *, block_batch=256):
    """z: (B, latent_dim) f32.  params: dict of (w1,b1,...,w4,b4), f32."""
    w1, b1, w2, b2, w3, b3, w4, b4 = (params[k] for k in
                                      ("w1", "b1", "w2", "b2", "w3", "b3", "w4", "b4"))
    latent_dim = w1.shape[0]
    out_dim = w4.shape[1]
    assert z.shape[1] == latent_dim

    # --- Pad hidden widths up to the 128-lane width (zeros are exact through
    #     ReLU and multiply zero rows of the following weight -> free).
    h1, h2, h3 = w1.shape[1], w2.shape[1], w3.shape[1]
    h1p, h2p, h3p = (_round_up(d, 128) for d in (h1, h2, h3))

    w1p = jnp.pad(w1, ((0, 0), (0, h1p - h1)))
    b1p = jnp.pad(b1, ((0, 0), (0, h1p - h1)))
    w2p = jnp.pad(w2, ((0, h1p - h1), (0, h2p - h2)))
    b2p = jnp.pad(b2, ((0, 0), (0, h2p - h2)))
    w3p = jnp.pad(w3, ((0, h2p - h2), (0, h3p - h3)))
    b3p = jnp.pad(b3, ((0, 0), (0, h3p - h3)))
    w4p = jnp.pad(w4, ((0, h3p - h3), (0, 0)))
    b4p = b4

    # bf16 weights for the MXU; biases stay f32 (added to the f32 accumulator).
    w1p, w2p, w3p, w4p = (w.astype(jnp.bfloat16) for w in (w1p, w2p, w3p, w4p))
    b1p, b2p, b3p, b4p = (b.astype(jnp.float32) for b in (b1p, b2p, b3p, b4p))

    # --- Batch tiling: tile is a multiple of 8 (f32 sublane), pad rows to fit.
    B = z.shape[0]
    tb = min(block_batch, _round_up(B, 8))
    bp = _round_up(B, tb)
    zp = jnp.pad(z, ((0, bp - B), (0, 0))) if bp != B else z

    const = lambda i: (0, 0)  # weights/biases: same block every step -> resident

    out = pl.pallas_call(
        decoder_kernel,
        out_shape=jax.ShapeDtypeStruct((bp, out_dim), z.dtype),
        grid=(bp // tb,),
        in_specs=[
            pl.BlockSpec((tb, latent_dim), lambda i: (i, 0)),
            pl.BlockSpec(w1p.shape, const), pl.BlockSpec(b1p.shape, const),
            pl.BlockSpec(w2p.shape, const), pl.BlockSpec(b2p.shape, const),
            pl.BlockSpec(w3p.shape, const), pl.BlockSpec(b3p.shape, const),
            pl.BlockSpec(w4p.shape, const), pl.BlockSpec(b4p.shape, const),
        ],
        out_specs=pl.BlockSpec((tb, out_dim), lambda i: (i, 0)),
        compiler_params=pltpu.CompilerParams(
            dimension_semantics=("parallel",)),
    )(zp, w1p, b1p, w2p, b2p, w3p, b3p, w4p, b4p)

    return out[:B] if bp != B else out


def init_decoder_params(key, layers_size, latent_dim):
    """Deterministic init matching nn.Linear shapes (weights stored transposed)."""
    dims_in = [latent_dim, layers_size[3], layers_size[2], layers_size[1]]
    dims_out = [layers_size[3], layers_size[2], layers_size[1], layers_size[0]]
    params = {}
    for i, (din, dout) in enumerate(zip(dims_in, dims_out), start=1):
        key, kw, kb = jax.random.split(key, 3)
        bound = 1.0 / jnp.sqrt(din)
        params[f"w{i}"] = jax.random.uniform(kw, (din, dout), jnp.float32, -bound, bound)
        params[f"b{i}"] = jax.random.uniform(kb, (1, dout), jnp.float32, -bound, bound)
    return params


def decoder_reference_bf16(z, params):
    """Precision-matched reference: bf16 matmul inputs, f32 accumulation."""
    def lin(h, w, b):
        return jnp.dot(h.astype(jnp.bfloat16), w.astype(jnp.bfloat16),
                       preferred_element_type=jnp.float32) + b
    h = jnp.maximum(lin(z, params["w1"], params["b1"]), 0.0)
    h = jnp.maximum(lin(h, params["w2"], params["b2"]), 0.0)
    h = jnp.maximum(lin(h, params["w3"], params["b3"]), 0.0)
    return lin(h, params["w4"], params["b4"]).astype(z.dtype)


if __name__ == "__main__":
    key = jax.random.PRNGKey(0)
    k_param, k_z = jax.random.split(key)

    # layers_size = [D0, D1, D2, D3]; decoder path: latent -> D3 -> D2 -> D1 -> D0
    layers_size = [256, 128, 128, 64]
    latent_dim = 32
    batch = 8

    params = init_decoder_params(k_param, layers_size, latent_dim)
    z = jax.random.normal(k_z, (batch, latent_dim), jnp.float32)

    out = jax.block_until_ready(decoder_forward(z, params))
    ref = decoder_reference_bf16(z, params)

    assert out.shape == (batch, layers_size[0]), out.shape
    assert jnp.allclose(out, ref, atol=2e-3, rtol=2e-3), \
        float(jnp.max(jnp.abs(out - ref)))

    print("KERNEL_OK")
</pallas_src>

<mosaic_0001>
module attributes {stable_mosaic.version = 11 : i64} {
  func.func @decoder_kernel(%arg0: i32, %arg1: memref<8x32xf32, #tpu.memory_space<vmem>>, %arg2: memref<32x128xbf16, #tpu.memory_space<vmem>>, %arg3: memref<1x128xf32, #tpu.memory_space<vmem>>, %arg4: memref<128x128xbf16, #tpu.memory_space<vmem>>, %arg5: memref<1x128xf32, #tpu.memory_space<vmem>>, %arg6: memref<128x128xbf16, #tpu.memory_space<vmem>>, %arg7: memref<1x128xf32, #tpu.memory_space<vmem>>, %arg8: memref<128x256xbf16, #tpu.memory_space<vmem>>, %arg9: memref<1x256xf32, #tpu.memory_space<vmem>>, %arg10: memref<8x256xf32, #tpu.memory_space<vmem>>) attributes {dimension_semantics = [#tpu.dimension_semantics<parallel>], iteration_bounds = array<i64: 1>, scalar_prefetch = 0 : i64, scratch_operands = 0 : i64, tpu.core_type = #tpu.core_type<tc>, window_params = [{transform_indices = @transform_0, window_bounds = array<i64: 8, 32>}, {pipeline_mode = #tpu.pipeline_mode<synchronous>, transform_indices = @transform_1, window_bounds = array<i64: 32, 128>}, {pipeline_mode = #tpu.pipeline_mode<synchronous>, transform_indices = @transform_2, window_bounds = array<i64: 1, 128>}, {pipeline_mode = #tpu.pipeline_mode<synchronous>, transform_indices = @transform_3, window_bounds = array<i64: 128, 128>}, {pipeline_mode = #tpu.pipeline_mode<synchronous>, transform_indices = @transform_4, window_bounds = array<i64: 1, 128>}, {pipeline_mode = #tpu.pipeline_mode<synchronous>, transform_indices = @transform_5, window_bounds = array<i64: 128, 128>}, {pipeline_mode = #tpu.pipeline_mode<synchronous>, transform_indices = @transform_6, window_bounds = array<i64: 1, 128>}, {pipeline_mode = #tpu.pipeline_mode<synchronous>, transform_indices = @transform_7, window_bounds = array<i64: 128, 256>}, {pipeline_mode = #tpu.pipeline_mode<synchronous>, transform_indices = @transform_8, window_bounds = array<i64: 1, 256>}, {transform_indices = @transform_9, window_bounds = array<i64: 8, 256>}]} {
    %c0 = arith.constant 0 : index
    %c0_0 = arith.constant 0 : index
    %0 = vector.load %arg1[%c0, %c0_0] : memref<8x32xf32, #tpu.memory_space<vmem>>, vector<8x32xf32>
    %1 = arith.truncf %0 : vector<8x32xf32> to vector<8x32xbf16>
    %c0_1 = arith.constant 0 : index
    %c0_2 = arith.constant 0 : index
    %2 = vector.load %arg2[%c0_1, %c0_2] : memref<32x128xbf16, #tpu.memory_space<vmem>>, vector<32x128xbf16>
    %cst = arith.constant dense<0.000000e+00> : vector<8x128xf32>
    %3 = tpu.matmul %1, %2, %cst {dimension_numbers = #tpu.dot_dimension_numbers<[1], [0], [0], [1], [0, 0, 1, 1], [], []>} : vector<8x32xbf16>, vector<32x128xbf16>, vector<8x128xf32> -> vector<8x128xf32>
    %c0_3 = arith.constant 0 : index
    %c0_4 = arith.constant 0 : index
    %4 = vector.load %arg3[%c0_3, %c0_4] : memref<1x128xf32, #tpu.memory_space<vmem>>, vector<1x128xf32>
    %5 = vector.broadcast %4 : vector<1x128xf32> to vector<8x128xf32>
    %6 = arith.addf %3, %5 : vector<8x128xf32>
    %cst_5 = arith.constant 0.000000e+00 : f32
    %7 = vector.broadcast %cst_5 : f32 to vector<8x128xf32>
    %8 = arith.maximumf %6, %7 : vector<8x128xf32>
    %9 = arith.truncf %8 : vector<8x128xf32> to vector<8x128xbf16>
    %c0_6 = arith.constant 0 : index
    %c0_7 = arith.constant 0 : index
    %10 = vector.load %arg4[%c0_6, %c0_7] : memref<128x128xbf16, #tpu.memory_space<vmem>>, vector<128x128xbf16>
    %cst_8 = arith.constant dense<0.000000e+00> : vector<8x128xf32>
    %11 = tpu.matmul %9, %10, %cst_8 {dimension_numbers = #tpu.dot_dimension_numbers<[1], [0], [0], [1], [0, 0, 1, 1], [], []>} : vector<8x128xbf16>, vector<128x128xbf16>, vector<8x128xf32> -> vector<8x128xf32>
    %c0_9 = arith.constant 0 : index
    %c0_10 = arith.constant 0 : index
    %12 = vector.load %arg5[%c0_9, %c0_10] : memref<1x128xf32, #tpu.memory_space<vmem>>, vector<1x128xf32>
    %13 = vector.broadcast %12 : vector<1x128xf32> to vector<8x128xf32>
    %14 = arith.addf %11, %13 : vector<8x128xf32>
    %cst_11 = arith.constant 0.000000e+00 : f32
    %15 = vector.broadcast %cst_11 : f32 to vector<8x128xf32>
    %16 = arith.maximumf %14, %15 : vector<8x128xf32>
    %17 = arith.truncf %16 : vector<8x128xf32> to vector<8x128xbf16>
    %c0_12 = arith.constant 0 : index
    %c0_13 = arith.constant 0 : index
    %18 = vector.load %arg6[%c0_12, %c0_13] : memref<128x128xbf16, #tpu.memory_space<vmem>>, vector<128x128xbf16>
    %cst_14 = arith.constant dense<0.000000e+00> : vector<8x128xf32>
    %19 = tpu.matmul %17, %18, %cst_14 {dimension_numbers = #tpu.dot_dimension_numbers<[1], [0], [0], [1], [0, 0, 1, 1], [], []>} : vector<8x128xbf16>, vector<128x128xbf16>, vector<8x128xf32> -> vector<8x128xf32>
    %c0_15 = arith.constant 0 : index
    %c0_16 = arith.constant 0 : index
    %20 = vector.load %arg7[%c0_15, %c0_16] : memref<1x128xf32, #tpu.memory_space<vmem>>, vector<1x128xf32>
    %21 = vector.broadcast %20 : vector<1x128xf32> to vector<8x128xf32>
    %22 = arith.addf %19, %21 : vector<8x128xf32>
    %cst_17 = arith.constant 0.000000e+00 : f32
    %23 = vector.broadcast %cst_17 : f32 to vector<8x128xf32>
    %24 = arith.maximumf %22, %23 : vector<8x128xf32>
    %25 = arith.truncf %24 : vector<8x128xf32> to vector<8x128xbf16>
    %c0_18 = arith.constant 0 : index
    %c0_19 = arith.constant 0 : index
    %26 = vector.load %arg8[%c0_18, %c0_19] : memref<128x256xbf16, #tpu.memory_space<vmem>>, vector<128x256xbf16>
    %cst_20 = arith.constant dense<0.000000e+00> : vector<8x256xf32>
    %27 = tpu.matmul %25, %26, %cst_20 {dimension_numbers = #tpu.dot_dimension_numbers<[1], [0], [0], [1], [0, 0, 1, 1], [], []>} : vector<8x128xbf16>, vector<128x256xbf16>, vector<8x256xf32> -> vector<8x256xf32>
    %c0_21 = arith.constant 0 : index
    %c0_22 = arith.constant 0 : index
    %28 = vector.load %arg9[%c0_21, %c0_22] : memref<1x256xf32, #tpu.memory_space<vmem>>, vector<1x256xf32>
    %29 = vector.broadcast %28 : vector<1x256xf32> to vector<8x256xf32>
    %30 = arith.addf %27, %29 : vector<8x256xf32>
    %c0_23 = arith.constant 0 : index
    %c0_24 = arith.constant 0 : index
    %31 = vector.load %arg10[%c0_23, %c0_24] : memref<8x256xf32, #tpu.memory_space<vmem>>, vector<8x256xf32>
    tpu.vector_store %arg10[%c0_23, %c0_24], %30 {strides = array<i32>} : memref<8x256xf32, #tpu.memory_space<vmem>>, vector<8x256xf32>,
    return
  }
  func.func @transform_0(%arg0: i32) -> (i32, i32) {
    %c0_i32 = arith.constant 0 : i32
    %c0_i32_0 = arith.constant 0 : i32
    return %arg0, %c0_i32 : i32, i32
  }
  func.func @transform_1(%arg0: i32) -> (i32, i32) {
    %c0_i32 = arith.constant 0 : i32
    %c0_i32_0 = arith.constant 0 : i32
    %c0_i32_1 = arith.constant 0 : i32
    return %c0_i32, %c0_i32_0 : i32, i32
  }
  func.func @transform_2(%arg0: i32) -> (i32, i32) {
    %c0_i32 = arith.constant 0 : i32
    %c0_i32_0 = arith.constant 0 : i32
    %c0_i32_1 = arith.constant 0 : i32
    return %c0_i32, %c0_i32_0 : i32, i32
  }
  func.func @transform_3(%arg0: i32) -> (i32, i32) {
    %c0_i32 = arith.constant 0 : i32
    %c0_i32_0 = arith.constant 0 : i32
    %c0_i32_1 = arith.constant 0 : i32
    return %c0_i32, %c0_i32_0 : i32, i32
  }
  func.func @transform_4(%arg0: i32) -> (i32, i32) {
    %c0_i32 = arith.constant 0 : i32
    %c0_i32_0 = arith.constant 0 : i32
    %c0_i32_1 = arith.constant 0 : i32
    return %c0_i32, %c0_i32_0 : i32, i32
  }
  func.func @transform_5(%arg0: i32) -> (i32, i32) {
    %c0_i32 = arith.constant 0 : i32
    %c0_i32_0 = arith.constant 0 : i32
    %c0_i32_1 = arith.constant 0 : i32
    return %c0_i32, %c0_i32_0 : i32, i32
  }
  func.func @transform_6(%arg0: i32) -> (i32, i32) {
    %c0_i32 = arith.constant 0 : i32
    %c0_i32_0 = arith.constant 0 : i32
    %c0_i32_1 = arith.constant 0 : i32
    return %c0_i32, %c0_i32_0 : i32, i32
  }
  func.func @transform_7(%arg0: i32) -> (i32, i32) {
    %c0_i32 = arith.constant 0 : i32
    %c0_i32_0 = arith.constant 0 : i32
    %c0_i32_1 = arith.constant 0 : i32
    return %c0_i32, %c0_i32_0 : i32, i32
  }
  func.func @transform_8(%arg0: i32) -> (i32, i32) {
    %c0_i32 = arith.constant 0 : i32
    %c0_i32_0 = arith.constant 0 : i32
    %c0_i32_1 = arith.constant 0 : i32
    return %c0_i32, %c0_i32_0 : i32, i32
  }
  func.func @transform_9(%arg0: i32) -> (i32, i32) {
    %c0_i32 = arith.constant 0 : i32
    %c0_i32_0 = arith.constant 0 : i32
    return %arg0, %c0_i32 : i32, i32
  }
}

</mosaic_0001>

<bundles_post_ra>
// kernel: tpu_custom_call.1
= control target key start
LH: loop header
LB: loop body
LE: loop exit
PB: predicated region body
PF: predicated region fallthrough
CT: control target
= control target key end

     0   :  { %14 = vsyncpa [#allocation3], 0  ;;  %s944_s0 = inlined_call_operand.hbm [shape: f32[8,32], index: 0, kind: input, shape index: {}]   ;;  %s945_s1 = inlined_call_operand.hbm [shape: bf16[32,128], index: 1, kind: input, shape index: {}]   ;;  %s946_s2 = inlined_call_operand.vmem [shape: f32[1,128], index: 2, kind: input, shape index: {}]   ;;  %s947_s3 = inlined_call_operand.hbm [shape: bf16[128,128], index: 3, kind: input, shape index: {}]   ;;  %s948_s4 = inlined_call_operand.hbm [shape: f32[1,128], index: 4, kind: input, shape index: {}]   ;;  %s949_s5 = inlined_call_operand.hbm [shape: bf16[128,128], index: 5, kind: input, shape index: {}]   ;;  %s950_s6 = inlined_call_operand.vmem [shape: f32[1,128], index: 6, kind: input, shape index: {}]   ;;  %s951_s7 = inlined_call_operand.hbm [shape: bf16[128,256], index: 7, kind: input, shape index: {}]   ;;  %s952_s8 = inlined_call_operand.vmem [shape: f32[1,256], index: 8, kind: input, shape index: {}]   ;;  %s953_s9 = inlined_call_operand.hbm [shape: f32[8,256], index: 9, kind: output, shape index: {}]  }
   0x1   :  { %15 = vsyncpa [#allocation6], 0 }
   0x2   :  { %16 = vsyncpa [#allocation9], 0 }
   0x3   :  { %17 = vsyncpa [#allocation12], 0  ;;  %s34_s11 = sshll.u32 %s945_s1, 4  ;;  %s35_s11 = int_to_ptr.hbm [resolvable:$true] %s34_s11 }
   0x4   :  { %18 = vsyncpa [#allocation4], 0  ;;  %s844_s12 = smov [#allocation5]   ;;  %s63_s16 = sshll.u32 %s948_s4, 4  ;;  %s64_s16 = int_to_ptr.hbm [resolvable:$true] %s63_s16 }
   0x5   :  { %s36_s13 = sshll.u32 %s844_s12, 4  ;;  %s845_s17 = smov 64   ;;  %s37_s13 = int_to_ptr.vmem [resolvable:$true] %s36_s13 }
   0x6   :  { %s846_s18 = smov 4   ;;  %s847_s19 = smov [#allocation8]  }
   0x7   :  { %42 = dma.hbm_to_vmem [thread:$0]  %s35_s11, 256, %s37_s13, [#allocation6], %s845_s17, %s845_s17, %s846_s18  }
   0x8   :  { %s65_s20 = sshll.u32 %s847_s19, 4  ;;  %s24_s22 = sshll.u32 %s944_s0, 4  ;;  %s66_s20 = int_to_ptr.vmem [resolvable:$true] %s65_s20  ;;  %s25_s22 = int_to_ptr.hbm [resolvable:$true] %s24_s22 }
   0x9   :  { %68 = dma.hbm_to_vmem [thread:$0]  %s64_s16, 16, %s66_s20, [#allocation9]  }
   0xa   :  { %s49_s4 = sshll.u32 %s947_s3, 4  ;;  %s848_s25 = smov [#allocation2]   ;;  %s50_s4 = int_to_ptr.hbm [resolvable:$true] %s49_s4 }
   0xb   :  { %s26_s26 = sshll.u32 %s848_s25, 4  ;;  %s849_s27 = smov [#allocation7]   ;;  %s27_s26 = int_to_ptr.vmem [resolvable:$true] %s26_s26 }
   0xc   :  { %29 = dma.hbm_to_vmem [thread:$0]  %s25_s22, 128, %s27_s26, [#allocation3]  }
   0xd   :  { %s51_s28 = sshll.u32 %s849_s27, 4  ;;  %s73_s10 = sshll.u32 %s949_s5, 4  ;;  %s52_s28 = int_to_ptr.vmem [resolvable:$true] %s51_s28  ;;  %s74_s10 = int_to_ptr.hbm [resolvable:$true] %s73_s10 }
   0xe   :  { %57 = dma.hbm_to_vmem [thread:$0]  %s50_s4, 1024, %s52_s28, [#allocation6], %s845_s17, %s845_s17, %s846_s18  }
   0xf   :  { %s88_s3 = sshll.u32 %s951_s7, 4  ;;  %s850_s12 = smov [#allocation10]   ;;  %s89_s3 = int_to_ptr.hbm [resolvable:$true] %s88_s3 }
  0x10   :  { %s75_s13 = sshll.u32 %s850_s12, 4  ;;  %s851_s14 = smov [#allocation11]   ;;  %s76_s13 = int_to_ptr.vmem [resolvable:$true] %s75_s13 }
  0x11   :  { %81 = dma.hbm_to_vmem [thread:$0]  %s74_s10, 1024, %s76_s13, [#allocation9], %s845_s17, %s845_s17, %s846_s18  }
  0x12   :  { %s90_s5 = sshll.u32 %s851_s14, 4  ;;  %s852_s15 = smov 128   ;;  %s91_s5 = int_to_ptr.vmem [resolvable:$true] %s90_s5 }
  0x13   :  { %s853_s16 = smov 8  }
  0x14   :  { %96 = dma.hbm_to_vmem [thread:$0]  %s89_s3, 2048, %s91_s5, [#allocation12], %s852_s15, %s852_s15, %s853_s16  }
  0x15   :  { %834 = dma.done.wait [#allocation3], 128  }
  0x16   :  { %835 = vsyncadd [#allocation3], 4294967168 }
  0x17   :  { %836 = dma.done.wait [#allocation6], 1280  }
  0x18   :  { %837 = vsyncadd [#allocation6], 4294966016 }
  0x19   :  { %838 = dma.done.wait [#allocation9], 1040  }
  0x1a   :  { %839 = vsyncadd [#allocation9], 4294966256 }
  0x1b   :  { %840 = dma.done.wait [#allocation12], 2048  }
  0x1c   :  { %841 = vsyncadd [#allocation12], 4294965248  ;;  %v619_v0 = vld [vmem:[#allocation5 + $0x8] sm:$0xff]  ;;  %v618_v2 = vld [vmem:[#allocation5] sm:$0xff]  ;;  %vm146_vm0 = vcmask 261120   ;;  %s854_s21 = smov [#allocation13]  }
  0x1d   :  { %v627_v1 = vld [vmem:[#allocation7 + $0x38] sm:$0xff]  ;;  %156 = vmatpush.bf16.msra.mxu0 %v619_v0  ;;  %v124_v3 = vld [vmem:[#allocation2] sm:$0xff]  ;;  %v626_v4 = vld [vmem:[#allocation7 + $0x30] sm:$0xff]  ;;  %s466_s1 = sshll.u32 %s854_s21, 4  ;;  %s468_s23 = sshll.u32 %s953_s9, 4  ;;  %s467_s1 = int_to_ptr.vmem [resolvable:$true] %s466_s1  ;;  %s469_s23 = int_to_ptr.hbm [resolvable:$true] %s468_s23 }
  0x1e   :  { %233 = vmatpush.bf16.msra.mxu1 %v627_v1  ;;  %v125_v5 = vpack.c.bf16 %v124_v3, %v124_v3  ;;  %v625_v6 = vld [vmem:[#allocation7 + $0x28] sm:$0xff]  ;;  %v624_v7 = vld [vmem:[#allocation7 + $0x20] sm:$0xff]  ;;  %v623_v8 = vld [vmem:[#allocation7 + $0x18] sm:$0xff] }
  0x1f   :  { %v622_v9 = vld [vmem:[#allocation7 + $0x10] sm:$0xff]  ;;  %v621_v10 = vld [vmem:[#allocation7 + $0x8] sm:$0xff]  ;;  %v620_v11 = vld [vmem:[#allocation7] sm:$0xff] }
  0x20   :  { %v635_v12 = vld [vmem:[#allocation10 + $0x38] sm:$0xff]  ;;  %v634_v13 = vld [vmem:[#allocation10 + $0x30] sm:$0xff]  ;;  %v633_v14 = vld [vmem:[#allocation10 + $0x28] sm:$0xff] }
  0x21   :  { %157 = vmatpush.bf16.msra.mxu0 %v618_v2  ;;  %316 = vmatpush.bf16.msra.mxu2 %v635_v12  ;;  %v632_v15 = vld [vmem:[#allocation10 + $0x20] sm:$0xff]  ;;  %v631_v16 = vld [vmem:[#allocation10 + $0x18] sm:$0xff]  ;;  %v630_v17 = vld [vmem:[#allocation10 + $0x10] sm:$0xff] }
  0x22   :  { %234 = vmatpush.bf16.msra.mxu1 %v626_v4  ;;  %v663_v18 = vld [vmem:[%s946_s2] ss:$0 sm:$0xff]  ;;  %v629_v24 = vld [vmem:[#allocation10 + $0x8] sm:$0xff]  ;;  %v612_v26 = vld [vmem:[#allocation11 + $0x70] sm:$0xf] }
  0x23   :  { %v628_v25 = vld [vmem:[#allocation10] sm:$0xff]  ;;  %v651_v27 = vld [vmem:[#allocation11 + $0x74] sm:$0xf0]  ;;  %v650_v28 = vld [vmem:[#allocation11 + $0x74] sm:$0xf] }
  0x24   :  { %489 = vmatmul.msk.bf16.vlgmr.msra.gmra.mxu0 %vm146_vm0, %v125_v5  ;;  %v613_v29 = vor.u32 %v651_v27, %v612_v26  ;;  %v614_v30 = vld [vmem:[#allocation11 + $0x78] sm:$0xf0]  ;;  %v604_v31 = vld [vmem:[#allocation11 + $0x60] sm:$0xf]  ;;  %v649_v32 = vld [vmem:[#allocation11 + $0x64] sm:$0xf0] }
  0x25   :  { %317 = vmatpush.bf16.msra.mxu2 %v634_v13  ;;  %v617_v33 = vor.u32 %v650_v28, %v614_v30  ;;  %v648_v34 = vld [vmem:[#allocation11 + $0x64] sm:$0xf]  ;;  %v606_v35 = vld [vmem:[#allocation11 + $0x68] sm:$0xf0]  ;;  %v605_v36 = vor.u32 %v649_v32, %v604_v31  ;;  %v596_v38 = vld [vmem:[#allocation11 + $0x50] sm:$0xf] }
  0x26   :  { %235 = vmatpush.bf16.msra.mxu1 %v625_v6  ;;  %433 = vmatpush.bf16.msra.mxu3 %v613_v29  ;;  %v609_v37 = vor.u32 %v648_v34, %v606_v35  ;;  %v647_v39 = vld [vmem:[#allocation11 + $0x54] sm:$0xf0]  ;;  %v646_v40 = vld [vmem:[#allocation11 + $0x54] sm:$0xf]  ;;  %v598_v41 = vld [vmem:[#allocation11 + $0x58] sm:$0xf0] }
  0x27   :  { %446 = vmatpush.bf16.msrb.mxu0 %v617_v33  ;;  %v597_v42 = vor.u32 %v647_v39, %v596_v38  ;;  %v601_v43 = vor.u32 %v646_v40, %v598_v41  ;;  %v588_v44 = vld [vmem:[#allocation11 + $0x40] sm:$0xf]  ;;  %v645_v45 = vld [vmem:[#allocation11 + $0x44] sm:$0xf0]  ;;  %v644_v46 = vld [vmem:[#allocation11 + $0x44] sm:$0xf] }
  0x28   :  { %v590_v47 = vld [vmem:[#allocation11 + $0x48] sm:$0xf0]  ;;  %v589_v48 = vor.u32 %v645_v45, %v588_v44  ;;  %v580_v50 = vld [vmem:[#allocation11 + $0x30] sm:$0xf]  ;;  %v643_v51 = vld [vmem:[#allocation11 + $0x34] sm:$0xf0] }
  0x29   :  { %318 = vmatpush.bf16.msra.mxu2 %v633_v14  ;;  %v593_v49 = vor.u32 %v644_v46, %v590_v47  ;;  %v642_v52 = vld [vmem:[#allocation11 + $0x34] sm:$0xf]  ;;  %v582_v53 = vld [vmem:[#allocation11 + $0x38] sm:$0xf0]  ;;  %v581_v54 = vor.u32 %v643_v51, %v580_v50  ;;  %v572_v56 = vld [vmem:[#allocation11 + $0x20] sm:$0xf] }
  0x2a   :  { %236 = vmatpush.bf16.msra.mxu1 %v624_v7  ;;  %434 = vmatpush.bf16.msra.mxu3 %v605_v36  ;;  %v585_v55 = vor.u32 %v642_v52, %v582_v53  ;;  %v641_v57 = vld [vmem:[#allocation11 + $0x24] sm:$0xf0]  ;;  %v640_v58 = vld [vmem:[#allocation11 + $0x24] sm:$0xf]  ;;  %v574_v59 = vld [vmem:[#allocation11 + $0x28] sm:$0xf0] }
  0x2b   :  { %447 = vmatpush.bf16.msrb.mxu0 %v609_v37  ;;  %v573_v60 = vor.u32 %v641_v57, %v572_v56  ;;  %v577_v61 = vor.u32 %v640_v58, %v574_v59  ;;  %v664_v62 = vld [vmem:[#allocation8] ss:$0 sm:$0xff]  ;;  %v564_v4 = vld [vmem:[#allocation11 + $0x10] sm:$0xf]  ;;  %v639_v5 = vld [vmem:[#allocation11 + $0x14] sm:$0xf0] }
  0x2c   :  { %v638_v6 = vld [vmem:[#allocation11 + $0x14] sm:$0xf]  ;;  %v565_v7 = vor.u32 %v639_v5, %v564_v4  ;;  %v636_v12 = vld [vmem:[#allocation11 + $0x4] sm:$0xf]  ;;  %v558_v14 = vld [vmem:[#allocation11 + $0x8] sm:$0xf0] }
  0x2d   :  { %319 = vmatpush.bf16.msra.mxu2 %v632_v15  ;;  %v561_v15 = vor.u32 %v636_v12, %v558_v14 }
  0x2e   :  { %237 = vmatpush.bf16.msra.mxu1 %v623_v8  ;;  %435 = vmatpush.bf16.msra.mxu3 %v597_v42  ;;  %v566_v8 = vld [vmem:[#allocation11 + $0x18] sm:$0xf0] }
  0x2f   :  { %448 = vmatpush.bf16.msrb.mxu0 %v601_v43 }
  0x31   :  { %320 = vmatpush.bf16.msra.mxu2 %v631_v16  ;;  %v665_v16 = vld [vmem:[%s950_s6] ss:$0 sm:$0xff] }
  0x32   :  { %238 = vmatpush.bf16.msra.mxu1 %v622_v9  ;;  %436 = vmatpush.bf16.msra.mxu3 %v589_v48  ;;  %v569_v9 = vor.u32 %v638_v6, %v566_v8 }
  0x33   :  { %449 = vmatpush.bf16.msrb.mxu0 %v593_v49 }
  0x35   :  { %321 = vmatpush.bf16.msra.mxu2 %v630_v17 }
  0x36   :  { %239 = vmatpush.bf16.msra.mxu1 %v621_v10  ;;  %437 = vmatpush.bf16.msra.mxu3 %v581_v54  ;;  %v556_v10 = vld [vmem:[#allocation11] sm:$0xf] }
  0x37   :  { %450 = vmatpush.bf16.msrb.mxu0 %v585_v55 }
  0x39   :  { %322 = vmatpush.bf16.msra.mxu2 %v629_v24 }
  0x3a   :  { %240 = vmatpush.bf16.msra.mxu1 %v620_v11  ;;  %438 = vmatpush.bf16.msra.mxu3 %v573_v60  ;;  %v637_v11 = vld [vmem:[#allocation11 + $0x4] sm:$0xf0] }
  0x3b   :  { %451 = vmatpush.bf16.msrb.mxu0 %v577_v61  ;;  %v557_v13 = vor.u32 %v637_v11, %v556_v10 }
  0x3d   :  { %323 = vmatpush.bf16.msra.mxu2 %v628_v25 }
  0x3e   :  { %439 = vmatpush.bf16.msra.mxu3 %v565_v7 }
  0x3f   :  { %452 = vmatpush.bf16.msrb.mxu0 %v569_v9 }
  0x42   :  { %440 = vmatpush.bf16.msra.mxu3 %v557_v13 }
  0x43   :  { %453 = vmatpush.bf16.msrb.mxu0 %v561_v15 }
  0xa1   :  { %v159_v19 = vpop.f32.mrf.mxu0 }
  0xa2   :  { %v160_v20 = vadd.f32 %v663_v18, %v159_v19 }
  0xa4   :  { %v163_v21 = vmax.f32 %v160_v20, 0.0 }
  0xa6   :  { %v164_v22 = vpack.c.bf16 %v163_v21, %v163_v21 }
  0xa8   :  { %241 = vmatmul.bf16.vlgmr.msra.gmra.mxu1 %v164_v22  ;;  %v347_v22 = vld [vmem:[%s952_s8] sm:$0x3] }
  0xa9   :  { %v161_v23 = vpop.f32.mrf.mxu0  ;;  %v349_v26 = vperm.slane %v347_v22, 0 }
  0xaa   :  { %v350_v23 = vperm.slane %v347_v22, 1 }
 0x125   :  { %v242_v63 = vpop.f32.mrf.mxu1 }
 0x126   :  { %v243_v0 = vadd.f32 %v664_v62, %v242_v63 }
 0x128   :  { %v246_v1 = vmax.f32 %v243_v0, 0.0 }
 0x12a   :  { %v247_v2 = vpack.c.bf16 %v246_v1, %v246_v1 }
 0x12c   :  { %324 = vmatmul.bf16.vlgmr.msra.gmra.mxu2 %v247_v2 }
 0x12d   :  { %v244_v3 = vpop.f32.mrf.mxu1 }
 0x1af   :  { %v325_v17 = vpop.f32.mrf.mxu2 }
 0x1b0   :  { %v326_v18 = vadd.f32 %v665_v16, %v325_v17 }
 0x1b2   :  { %v329_v19 = vmax.f32 %v326_v18, 0.0 }
 0x1b4   :  { %v330_v20 = vpack.c.bf16 %v329_v19, %v329_v19 }
 0x1b6   :  { %441 = vmatmul.bf16.vlgmr.msra.gmra.mxu3 %v330_v20  ;;  %454 = vmatmul.bf16.vlgmr.msrb.gmra.mxu0 %v330_v20 }
 0x1b7   :  { %v327_v21 = vpop.f32.mrf.mxu2 }
 0x233   :  { %v455_v24 = vpop.f32.mrf.mxu0 }
 0x234   :  { %v456_v25 = vadd.f32 %v455_v24, %v350_v23 }
 0x236   :  { %460 = vst [vmem:[#allocation13 + $0x8] sm:$0xff] %v456_v25 }
 0x239   :  { %v442_v27 = vpop.f32.mrf.mxu3 }
 0x23a   :  { %v443_v28 = vadd.f32 %v442_v27, %v349_v26 }
 0x23b   :  { %v457_v29 = vpop.f32.mrf.mxu0 }
 0x23c   :  { %459 = vst [vmem:[#allocation13] sm:$0xff] %v443_v28 }
 0x23d   :  { %471 = dma.vmem_to_hbm [thread:$0]  %s467_s1, 256, %s469_s23, [#allocation4]  }
 0x241   :  { %v444_v30 = vpop.f32.mrf.mxu3 }
 0x242   :  { %842 = dma.done.wait [#allocation4], 256  }
 0x243   :  { %843 = vsyncadd [#allocation4], 4294967040 }
 0x244   :  { %476 = vsyncpa [#allocation3], 1 }
 0x245   :  { %477 = vsyncpa [#allocation6], 1 }
 0x246   :  { %478 = vsyncpa [#allocation9], 1 }
 0x247   :  { %479 = vsyncpa [#allocation12], 1 }
 0x248   :  { %480 = vsyncpa [#allocation4], 1 }

</bundles_post_ra>
